<compile_context>
chip_gen: v7x
topology: tpu7x:2x2x1
jax: 0.10.0
libtpu: 0.0.40
codegen_flags: <defaults>
</compile_context>

<pallas_src>
import functools
import math

import jax
import jax.numpy as jnp
from jax.experimental import pallas as pl
from jax.experimental.pallas import tpu as pltpu


def _round_up(v, m):
    return ((v + m - 1) // m) * m


def _vmem_capacity_bytes():
    """Physical per-core VMEM for the current TPU generation (with safe fallback)."""
    try:
        return int(pltpu.get_tpu_info().vmem_capacity_bytes)
    except Exception:
        return 64 * 1024 * 1024  # conservative (v7x per-TensorCore figure)


def _gcn_kernel(x_ref, L_ref, w_ref, o_ref, T_ref, acc_ref, *, k, tile_n):
    """Chebyshev recurrence (streamed L) with the filter folded into the last phase.

    Grid = (k-1, num_row_tiles, num_col_tiles); the column axis is innermost.
    Phase j builds T_{j+1}; at (j == k-2, c == nc-1) the filter for row tile i is
    applied immediately after T_{k-1}[rows i] is written.
    """
    j = pl.program_id(0)      # recurrence phase: builds T_{j+1}
    i = pl.program_id(1)      # output row tile
    c = pl.program_id(2)      # reduction column tile (innermost)
    nc = pl.num_programs(2)

    row_start = pl.multiple_of(i * tile_n, tile_n)
    col_start = pl.multiple_of(c * tile_n, tile_n)

    # Seed T_0 = x, one node tile per column step, during phase 0 / row tile 0.
    # The i == 0 column sweep covers every node tile exactly once and completes
    # (in program / grid order) before any consumer of T_0: the j == 1 finalize
    # and the filter.  Do NOT reorder this below the finalize block.
    @pl.when(jnp.logical_and(j == 0, i == 0))
    def _seed_t0():
        T_ref[0, pl.ds(col_start, tile_n), :] = x_ref[...].astype(jnp.float32)

    # ---- acc(rows i) = sum_c L[i, c] @ T_j[c]  (streamed-L reduction) ------
    @pl.when(c == 0)
    def _zero_acc():
        acc_ref[...] = jnp.zeros_like(acc_ref)

    @pl.when(j == 0)
    def _acc_order1():
        # T_0 columns come straight from the streamed, native-dtype x block.
        acc_ref[...] += jnp.dot(L_ref[...], x_ref[...],
                                preferred_element_type=jnp.float32)

    if k > 2:
        @pl.when(j > 0)
        def _acc_orderj():
            acc_ref[...] += jnp.dot(L_ref[...],
                                    T_ref[j, pl.ds(col_start, tile_n), :],
                                    preferred_element_type=jnp.float32)

    # ---- End of the column sweep: finalize T_{j+1}[rows i]; on the last
    #      phase also apply the Chebyshev filter for this row tile. ----------
    @pl.when(c == nc - 1)
    def _finalize():
        @pl.when(j == 0)
        def _t1():                                  # T_1 = L @ T_0
            T_ref[1, pl.ds(row_start, tile_n), :] = acc_ref[...]

        if k > 2:
            @pl.when(j > 0)
            def _tj():                              # T_{j+1} = 2 L T_j - T_{j-1}
                T_ref[j + 1, pl.ds(row_start, tile_n), :] = (
                    2.0 * acc_ref[...]
                    - T_ref[j - 1, pl.ds(row_start, tile_n), :])

        # Filter (fused into the last phase).  Reads T_{k-1}[rows i] written just
        # above; ref effect ordering keeps the write before this read.
        @pl.when(j == k - 2)
        def _filter():
            out = jnp.dot(T_ref[0, pl.ds(row_start, tile_n), :], w_ref[0],
                          preferred_element_type=jnp.float32)
            for jj in range(1, k):                  # static unroll, no concatenate
                out += jnp.dot(T_ref[jj, pl.ds(row_start, tile_n), :], w_ref[jj],
                               preferred_element_type=jnp.float32)
            o_ref[...] = out.astype(o_ref.dtype)


def graph_convolution(x, L, weight, *, tile_n=512, l_buffers=2, l_dtype=None):
    """ChebNet graph convolution.  x:(n,in)  L:(n,n)  weight:(k,in,out) -> (n,out) f32.

    l_dtype: optional dtype (e.g. jnp.bfloat16) to stream L in; halves the dominant
             HBM traffic at a small accuracy cost.  Default keeps L's own dtype.
    l_buffers: pipeline depth for the streamed L blocks (2 = default double buffer).
    """
    k, in_f, out_f = weight.shape
    n = x.shape[0]
    assert L.shape == (n, n), "L must be (n, n)"

    # Lane-dense padding (feature axes -> multiples of 128); node axis padded to a
    # multiple of the row tile.  Zero padding is exact.
    in_pad = _round_up(in_f, 128)
    out_pad = _round_up(out_f, 128)
    if n <= tile_n:
        tile_n = _round_up(max(n, 8), 8)      # single tile (full-dim blocks)
        n_pad = tile_n
    else:
        assert tile_n % 128 == 0, "tile_n must be a multiple of 128 when n > tile_n"
        n_pad = _round_up(n, tile_n)
    num_tiles = n_pad // tile_n

    l_dtype = L.dtype if l_dtype is None else l_dtype
    xp = jnp.zeros((n_pad, in_pad), x.dtype).at[:n, :in_f].set(x)
    Lp = jnp.zeros((n_pad, n_pad), l_dtype).at[:n, :n].set(L.astype(l_dtype))
    wp = (jnp.zeros((k, in_pad, out_pad), weight.dtype)
          .at[:, :in_f, :out_f].set(weight))

    if k == 1:
        # Chebyshev order 1: out = x @ W[0]; no graph operator involved.
        def _k1_kernel(x_ref, w_ref, o_ref):
            o_ref[...] = jnp.dot(x_ref[...], w_ref[...],
                                 preferred_element_type=jnp.float32)

        out_padded = pl.pallas_call(
            _k1_kernel,
            out_shape=jax.ShapeDtypeStruct((n_pad, out_pad), jnp.float32),
            grid_spec=pltpu.PrefetchScalarGridSpec(
                num_scalar_prefetch=0, grid=(num_tiles,),
                in_specs=[pl.BlockSpec((tile_n, in_pad), lambda i: (i, 0)),
                          pl.BlockSpec((in_pad, out_pad), lambda i: (0, 0),
                                       pipeline_mode=pl.Buffered(1))],
                out_specs=pl.BlockSpec((tile_n, out_pad), lambda i: (i, 0))),
            compiler_params=pltpu.CompilerParams(
                dimension_semantics=("parallel",)),
        )(xp, wp[0])
        return out_padded[:n, :out_f]

    num_phases = k - 1
    last_phase = num_phases - 1
    grid = (num_phases, num_tiles, num_tiles)

    def x_index_map(j, i, c):
        # x only needed during phase 0 (as the T_0 column block); pin afterwards.
        return (jnp.where(j == 0, c, 0), 0)

    def o_index_map(j, i, c):
        # Output block i is only live (and written exactly once, at c == nc-1)
        # during the last phase -> no garbage flushes, minimal DMA transitions.
        return (jnp.where(j == last_phase, i, 0), 0)

    kernel = functools.partial(_gcn_kernel, k=k, tile_n=tile_n)

    # Roofline hints.  L is re-streamed every one of the k-1 recurrence phases.
    flops = (2 * num_phases * n_pad * n_pad * in_pad
             + 2 * n_pad * k * in_pad * out_pad)
    bytes_accessed = (num_phases * Lp.size * Lp.dtype.itemsize
                      + xp.size * xp.dtype.itemsize
                      + wp.size * wp.dtype.itemsize
                      + n_pad * out_pad * 4)

    # Itemized VMEM requirement (buffer counts explicit; no blanket 2x multiplier).
    basis_bytes = k * n_pad * in_pad * 4
    vmem_need = (l_buffers * tile_n * tile_n * Lp.dtype.itemsize   # streamed L
                 + 2 * tile_n * in_pad * xp.dtype.itemsize         # streamed x (double buf)
                 + 1 * k * in_pad * out_pad * wp.dtype.itemsize    # resident W (Buffered(1))
                 + 2 * tile_n * out_pad * 4                        # output blocks
                 + basis_bytes                                     # Chebyshev basis scratch
                 + tile_n * in_pad * 4)                            # L @ T_j accumulator
    vmem_cap = int(_vmem_capacity_bytes() * 0.85)  # leave headroom for Mosaic internals
    if vmem_need > vmem_cap:
        raise ValueError(
            f"GraphConvolution kernel needs ~{vmem_need / 2**20:.1f} MiB VMEM "
            f"(basis scratch alone: {basis_bytes / 2**20:.1f} MiB) but only "
            f"~{vmem_cap / 2**20:.1f} MiB is usable on this TPU generation; "
            "reduce tile_n / k or shard the node axis across calls.")
    vmem_limit = int(min(vmem_cap, max(vmem_need + 8 * 1024 * 1024,
                                       32 * 1024 * 1024)))

    # Only attach an explicit pipeline_mode to L when deviating from the default.
    l_spec_kwargs = {} if l_buffers == 2 else {"pipeline_mode": pl.Buffered(l_buffers)}

    out_padded = pl.pallas_call(
        kernel,
        out_shape=jax.ShapeDtypeStruct((n_pad, out_pad), jnp.float32),
        grid_spec=pltpu.PrefetchScalarGridSpec(
            num_scalar_prefetch=0,
            grid=grid,
            in_specs=[
                pl.BlockSpec((tile_n, in_pad), x_index_map),        # x streamed (phase 0)
                pl.BlockSpec((tile_n, tile_n), lambda j, i, c: (i, c),
                             **l_spec_kwargs),                      # L streamed
                pl.BlockSpec((k, in_pad, out_pad), lambda j, i, c: (0, 0, 0),
                             pipeline_mode=pl.Buffered(1)),         # W resident, single buf
            ],
            out_specs=pl.BlockSpec((tile_n, out_pad), o_index_map),
            scratch_shapes=[
                pltpu.VMEM((k, n_pad, in_pad), jnp.float32),   # Chebyshev basis
                pltpu.VMEM((tile_n, in_pad), jnp.float32),     # L @ T_j partial acc
            ],
        ),
        compiler_params=pltpu.CompilerParams(
            # The recurrence shares the VMEM basis scratch across row tiles and
            # phases, so no grid axis is safely core-parallel in this fused form.
            dimension_semantics=("arbitrary", "arbitrary", "arbitrary"),
            vmem_limit_bytes=vmem_limit,
        ),
        cost_estimate=pl.CostEstimate(flops=int(flops), transcendentals=0,
                                      bytes_accessed=int(bytes_accessed)),
    )(xp, Lp, wp)

    return out_padded[:n, :out_f]


def _reference(x, L, weight):
    """Pure-JAX reference of the same semantics."""
    k = weight.shape[0]
    x = x.astype(jnp.float32)
    L = L.astype(jnp.float32)
    basis = [x]
    if k > 1:
        basis.append(L @ x)
    for _ in range(2, k):
        basis.append(2.0 * (L @ basis[-1]) - basis[-2])
    Xt = jnp.stack(basis, axis=0)                      # (k, n, in)
    return jnp.einsum("kni,kio->no", Xt, weight.astype(jnp.float32))


def _make_problem(key, n, in_features, out_features, k):
    kx, ka, kw = jax.random.split(key, 3)
    x = jax.random.normal(kx, (n, in_features), dtype=jnp.float32)
    # Scaled normalized-Laplacian-like operator from a random symmetric adjacency.
    a = jax.random.uniform(ka, (n, n), dtype=jnp.float32)
    adj = (a + a.T) * 0.5
    adj = adj * (1.0 - jnp.eye(n, dtype=jnp.float32))
    deg = jnp.sum(adj, axis=1)
    d_inv_sqrt = 1.0 / jnp.sqrt(deg)
    L_norm = jnp.eye(n, dtype=jnp.float32) - (d_inv_sqrt[:, None] * adj *
                                              d_inv_sqrt[None, :])
    L = L_norm - jnp.eye(n, dtype=jnp.float32)         # rescaled (~ 2L/lmax - I)
    # reset_parameters(): U(-stdv, stdv), stdv = 1/sqrt(in_features).
    stdv = 1.0 / math.sqrt(in_features)
    weight = jax.random.uniform(kw, (k, in_features, out_features),
                                dtype=jnp.float32, minval=-stdv, maxval=stdv)
    return x, L, weight


if __name__ == "__main__":
    key = jax.random.PRNGKey(0)
    k1, k2, k3, k4 = jax.random.split(key, 4)

    # Small case at the module's intended scale: n=16 nodes, in=8, out=32, k=3.
    x, L, w = _make_problem(k1, n=16, in_features=8, out_features=32, k=3)
    out = jax.block_until_ready(graph_convolution(x, L, w))
    ref = _reference(x, L, w)
    assert out.shape == (16, 32) and out.dtype == jnp.float32
    assert jnp.allclose(out, ref, atol=1e-4, rtol=1e-4), "small-case mismatch"

    # Larger, non-aligned case exercising the multi-tile / multi-phase grid path.
    x2, L2, w2 = _make_problem(k2, n=300, in_features=12, out_features=40, k=4)
    out2 = jax.block_until_ready(graph_convolution(x2, L2, w2, tile_n=128))
    ref2 = _reference(x2, L2, w2)
    assert out2.shape == (300, 40) and out2.dtype == jnp.float32
    assert jnp.allclose(out2, ref2, atol=1e-3, rtol=1e-3), "tiled-case mismatch"

    # k == 2 path (single recurrence phase, filter folded into it).
    x3, L3, w3 = _make_problem(k3, n=64, in_features=8, out_features=16, k=2)
    out3 = jax.block_until_ready(graph_convolution(x3, L3, w3))
    ref3 = _reference(x3, L3, w3)
    assert jnp.allclose(out3, ref3, atol=1e-4, rtol=1e-4), "k=2 mismatch"

    # Degenerate k == 1 path (pure x @ W[0]).
    x4, L4, w4 = _make_problem(k4, n=16, in_features=8, out_features=8, k=1)
    out4 = jax.block_until_ready(graph_convolution(x4, L4, w4))
    ref4 = _reference(x4, L4, w4)
    assert jnp.allclose(out4, ref4, atol=1e-4, rtol=1e-4), "k=1 mismatch"

    print("KERNEL_OK")
</pallas_src>

<mosaic_0001>
module attributes {stable_mosaic.version = 11 : i64} {
  func.func @_gcn_kernel(%arg0: i32, %arg1: i32, %arg2: i32, %arg3: memref<16x128xf32, #tpu.memory_space<vmem>>, %arg4: memref<16x16xf32, #tpu.memory_space<vmem>>, %arg5: memref<3x128x128xf32, #tpu.memory_space<vmem>>, %arg6: memref<16x128xf32, #tpu.memory_space<vmem>>, %arg7: memref<3x16x128xf32, #tpu.memory_space<vmem>>, %arg8: memref<16x128xf32, #tpu.memory_space<vmem>>) attributes {dimension_semantics = [#tpu.dimension_semantics<arbitrary>, #tpu.dimension_semantics<arbitrary>, #tpu.dimension_semantics<arbitrary>], iteration_bounds = array<i64: 2, 1, 1>, scalar_prefetch = 0 : i64, scratch_operands = 2 : i64, tpu.core_type = #tpu.core_type<tc>, window_params = [{transform_indices = @transform_0, window_bounds = array<i64: 16, 128>}, {transform_indices = @transform_1, window_bounds = array<i64: 16, 16>}, {pipeline_mode = #tpu.pipeline_mode<synchronous>, transform_indices = @transform_2, window_bounds = array<i64: 3, 128, 128>}, {transform_indices = @transform_3, window_bounds = array<i64: 16, 128>}]} {
    %c16_i32 = arith.constant 16 : i32
    %0 = arith.muli %arg1, %c16_i32 : i32
    %1 = tpu.assume_multiple %0, 16 : i32
    %c16_i32_0 = arith.constant 16 : i32
    %2 = arith.muli %arg2, %c16_i32_0 : i32
    %3 = tpu.assume_multiple %2, 16 : i32
    %c0_i32 = arith.constant 0 : i32
    %4 = arith.cmpi eq, %arg0, %c0_i32 : i32
    %c0_i32_1 = arith.constant 0 : i32
    %5 = arith.cmpi eq, %arg1, %c0_i32_1 : i32
    %6 = arith.andi %4, %5 : i1
    %7 = arith.extui %6 : i1 to i32
    %c0_i32_2 = arith.constant 0 : i32
    %8 = arith.cmpi ne, %7, %c0_i32_2 : i32
    scf.if %8 {
      %c0 = arith.constant 0 : index
      %c0_11 = arith.constant 0 : index
      %21 = vector.load %arg3[%c0, %c0_11] : memref<16x128xf32, #tpu.memory_space<vmem>>, vector<16x128xf32>
      %c0_12 = arith.constant 0 : index
      %22 = arith.index_cast %3 : i32 to index
      %c0_13 = arith.constant 0 : index
      %23 = vector.load %arg7[%c0_12, %22, %c0_13] : memref<3x16x128xf32, #tpu.memory_space<vmem>>, vector<1x16x128xf32>
      %24 = vector.shape_cast %23 : vector<1x16x128xf32> to vector<16x128xf32>
      %25 = vector.shape_cast %21 : vector<16x128xf32> to vector<1x16x128xf32>
      tpu.vector_store %arg7[%c0_12, %22, %c0_13], %25 {strides = array<i32>} : memref<3x16x128xf32, #tpu.memory_space<vmem>>, vector<1x16x128xf32>,
    } else {
    }
    %c0_i32_3 = arith.constant 0 : i32
    %9 = arith.cmpi eq, %arg2, %c0_i32_3 : i32
    %10 = arith.extui %9 : i1 to i32
    %c0_i32_4 = arith.constant 0 : i32
    %11 = arith.cmpi ne, %10, %c0_i32_4 : i32
    scf.if %11 {
      %cst = arith.constant 0.000000e+00 : f32
      %21 = vector.broadcast %cst : f32 to vector<16x128xf32>
      %c0 = arith.constant 0 : index
      %c0_11 = arith.constant 0 : index
      %22 = vector.load %arg8[%c0, %c0_11] : memref<16x128xf32, #tpu.memory_space<vmem>>, vector<16x128xf32>
      tpu.vector_store %arg8[%c0, %c0_11], %21 {strides = array<i32>} : memref<16x128xf32, #tpu.memory_space<vmem>>, vector<16x128xf32>,
    } else {
    }
    %c0_i32_5 = arith.constant 0 : i32
    %12 = arith.cmpi eq, %arg0, %c0_i32_5 : i32
    %13 = arith.extui %12 : i1 to i32
    %c0_i32_6 = arith.constant 0 : i32
    %14 = arith.cmpi ne, %13, %c0_i32_6 : i32
    scf.if %14 {
      %c0 = arith.constant 0 : index
      %c0_11 = arith.constant 0 : index
      %21 = vector.load %arg8[%c0, %c0_11] : memref<16x128xf32, #tpu.memory_space<vmem>>, vector<16x128xf32>
      %c0_12 = arith.constant 0 : index
      %c0_13 = arith.constant 0 : index
      %22 = vector.load %arg4[%c0_12, %c0_13] : memref<16x16xf32, #tpu.memory_space<vmem>>, vector<16x16xf32>
      %c0_14 = arith.constant 0 : index
      %c0_15 = arith.constant 0 : index
      %23 = vector.load %arg3[%c0_14, %c0_15] : memref<16x128xf32, #tpu.memory_space<vmem>>, vector<16x128xf32>
      %cst = arith.constant dense<0.000000e+00> : vector<16x128xf32>
      %24 = tpu.matmul %22, %23, %cst {dimension_numbers = #tpu.dot_dimension_numbers<[1], [0], [0], [1], [0, 0, 1, 1], [], []>} : vector<16x16xf32>, vector<16x128xf32>, vector<16x128xf32> -> vector<16x128xf32>
      %25 = arith.addf %21, %24 : vector<16x128xf32>
      %c0_16 = arith.constant 0 : index
      %c0_17 = arith.constant 0 : index
      %26 = vector.load %arg8[%c0_16, %c0_17] : memref<16x128xf32, #tpu.memory_space<vmem>>, vector<16x128xf32>
      tpu.vector_store %arg8[%c0_16, %c0_17], %25 {strides = array<i32>} : memref<16x128xf32, #tpu.memory_space<vmem>>, vector<16x128xf32>,
    } else {
    }
    %c0_i32_7 = arith.constant 0 : i32
    %15 = arith.cmpi sgt, %arg0, %c0_i32_7 : i32
    %16 = arith.extui %15 : i1 to i32
    %c0_i32_8 = arith.constant 0 : i32
    %17 = arith.cmpi ne, %16, %c0_i32_8 : i32
    scf.if %17 {
      %c0 = arith.constant 0 : index
      %c0_11 = arith.constant 0 : index
      %21 = vector.load %arg8[%c0, %c0_11] : memref<16x128xf32, #tpu.memory_space<vmem>>, vector<16x128xf32>
      %c0_12 = arith.constant 0 : index
      %c0_13 = arith.constant 0 : index
      %22 = vector.load %arg4[%c0_12, %c0_13] : memref<16x16xf32, #tpu.memory_space<vmem>>, vector<16x16xf32>
      %23 = arith.index_cast %arg0 : i32 to index
      %24 = arith.index_cast %3 : i32 to index
      %c0_14 = arith.constant 0 : index
      %25 = vector.load %arg7[%23, %24, %c0_14] : memref<3x16x128xf32, #tpu.memory_space<vmem>>, vector<1x16x128xf32>
      %26 = vector.shape_cast %25 : vector<1x16x128xf32> to vector<16x128xf32>
      %cst = arith.constant dense<0.000000e+00> : vector<16x128xf32>
      %27 = tpu.matmul %22, %26, %cst {dimension_numbers = #tpu.dot_dimension_numbers<[1], [0], [0], [1], [0, 0, 1, 1], [], []>} : vector<16x16xf32>, vector<16x128xf32>, vector<16x128xf32> -> vector<16x128xf32>
      %28 = arith.addf %21, %27 : vector<16x128xf32>
      %c0_15 = arith.constant 0 : index
      %c0_16 = arith.constant 0 : index
      %29 = vector.load %arg8[%c0_15, %c0_16] : memref<16x128xf32, #tpu.memory_space<vmem>>, vector<16x128xf32>
      tpu.vector_store %arg8[%c0_15, %c0_16], %28 {strides = array<i32>} : memref<16x128xf32, #tpu.memory_space<vmem>>, vector<16x128xf32>,
    } else {
    }
    %c0_i32_9 = arith.constant 0 : i32
    %18 = arith.cmpi eq, %arg2, %c0_i32_9 : i32
    %19 = arith.extui %18 : i1 to i32
    %c0_i32_10 = arith.constant 0 : i32
    %20 = arith.cmpi ne, %19, %c0_i32_10 : i32
    scf.if %20 {
      %c0_i32_11 = arith.constant 0 : i32
      %21 = arith.cmpi eq, %arg0, %c0_i32_11 : i32
      %22 = arith.extui %21 : i1 to i32
      %c0_i32_12 = arith.constant 0 : i32
      %23 = arith.cmpi ne, %22, %c0_i32_12 : i32
      scf.if %23 {
        %c0 = arith.constant 0 : index
        %c0_16 = arith.constant 0 : index
        %30 = vector.load %arg8[%c0, %c0_16] : memref<16x128xf32, #tpu.memory_space<vmem>>, vector<16x128xf32>
        %c1 = arith.constant 1 : index
        %31 = arith.index_cast %1 : i32 to index
        %c0_17 = arith.constant 0 : index
        %32 = vector.load %arg7[%c1, %31, %c0_17] : memref<3x16x128xf32, #tpu.memory_space<vmem>>, vector<1x16x128xf32>
        %33 = vector.shape_cast %32 : vector<1x16x128xf32> to vector<16x128xf32>
        %34 = vector.shape_cast %30 : vector<16x128xf32> to vector<1x16x128xf32>
        tpu.vector_store %arg7[%c1, %31, %c0_17], %34 {strides = array<i32>} : memref<3x16x128xf32, #tpu.memory_space<vmem>>, vector<1x16x128xf32>,
      } else {
      }
      %c0_i32_13 = arith.constant 0 : i32
      %24 = arith.cmpi sgt, %arg0, %c0_i32_13 : i32
      %25 = arith.extui %24 : i1 to i32
      %c0_i32_14 = arith.constant 0 : i32
      %26 = arith.cmpi ne, %25, %c0_i32_14 : i32
      scf.if %26 {
        %c0 = arith.constant 0 : index
        %c0_16 = arith.constant 0 : index
        %30 = vector.load %arg8[%c0, %c0_16] : memref<16x128xf32, #tpu.memory_space<vmem>>, vector<16x128xf32>
        %cst = arith.constant 2.000000e+00 : f32
        %31 = vector.broadcast %cst : f32 to vector<16x128xf32>
        %32 = arith.mulf %31, %30 : vector<16x128xf32>
        %c1_i32_17 = arith.constant 1 : i32
        %33 = arith.subi %arg0, %c1_i32_17 : i32
        %34 = arith.index_cast %33 : i32 to index
        %35 = arith.index_cast %1 : i32 to index
        %c0_18 = arith.constant 0 : index
        %36 = vector.load %arg7[%34, %35, %c0_18] : memref<3x16x128xf32, #tpu.memory_space<vmem>>, vector<1x16x128xf32>
        %37 = vector.shape_cast %36 : vector<1x16x128xf32> to vector<16x128xf32>
        %38 = arith.subf %32, %37 : vector<16x128xf32>
        %c1_i32_19 = arith.constant 1 : i32
        %39 = arith.addi %arg0, %c1_i32_19 : i32
        %40 = arith.index_cast %39 : i32 to index
        %41 = arith.index_cast %1 : i32 to index
        %c0_20 = arith.constant 0 : index
        %42 = vector.load %arg7[%40, %41, %c0_20] : memref<3x16x128xf32, #tpu.memory_space<vmem>>, vector<1x16x128xf32>
        %43 = vector.shape_cast %42 : vector<1x16x128xf32> to vector<16x128xf32>
        %44 = vector.shape_cast %38 : vector<16x128xf32> to vector<1x16x128xf32>
        tpu.vector_store %arg7[%40, %41, %c0_20], %44 {strides = array<i32>} : memref<3x16x128xf32, #tpu.memory_space<vmem>>, vector<1x16x128xf32>,
      } else {
      }
      %c1_i32 = arith.constant 1 : i32
      %27 = arith.cmpi eq, %arg0, %c1_i32 : i32
      %28 = arith.extui %27 : i1 to i32
      %c0_i32_15 = arith.constant 0 : i32
      %29 = arith.cmpi ne, %28, %c0_i32_15 : i32
      scf.if %29 {
        %c0 = arith.constant 0 : index
        %30 = arith.index_cast %1 : i32 to index
        %c0_16 = arith.constant 0 : index
        %31 = vector.load %arg7[%c0, %30, %c0_16] : memref<3x16x128xf32, #tpu.memory_space<vmem>>, vector<1x16x128xf32>
        %32 = vector.shape_cast %31 : vector<1x16x128xf32> to vector<16x128xf32>
        %c0_17 = arith.constant 0 : index
        %c0_18 = arith.constant 0 : index
        %c0_19 = arith.constant 0 : index
        %33 = vector.load %arg5[%c0_17, %c0_18, %c0_19] : memref<3x128x128xf32, #tpu.memory_space<vmem>>, vector<1x128x128xf32>
        %34 = vector.shape_cast %33 : vector<1x128x128xf32> to vector<128x128xf32>
        %cst = arith.constant dense<0.000000e+00> : vector<16x128xf32>
        %35 = tpu.matmul %32, %34, %cst {dimension_numbers = #tpu.dot_dimension_numbers<[1], [0], [0], [1], [0, 0, 1, 1], [], []>} : vector<16x128xf32>, vector<128x128xf32>, vector<16x128xf32> -> vector<16x128xf32>
        %c1 = arith.constant 1 : index
        %36 = arith.index_cast %1 : i32 to index
        %c0_20 = arith.constant 0 : index
        %37 = vector.load %arg7[%c1, %36, %c0_20] : memref<3x16x128xf32, #tpu.memory_space<vmem>>, vector<1x16x128xf32>
        %38 = vector.shape_cast %37 : vector<1x16x128xf32> to vector<16x128xf32>
        %c1_21 = arith.constant 1 : index
        %c0_22 = arith.constant 0 : index
        %c0_23 = arith.constant 0 : index
        %39 = vector.load %arg5[%c1_21, %c0_22, %c0_23] : memref<3x128x128xf32, #tpu.memory_space<vmem>>, vector<1x128x128xf32>
        %40 = vector.shape_cast %39 : vector<1x128x128xf32> to vector<128x128xf32>
        %cst_24 = arith.constant dense<0.000000e+00> : vector<16x128xf32>
        %41 = tpu.matmul %38, %40, %cst_24 {dimension_numbers = #tpu.dot_dimension_numbers<[1], [0], [0], [1], [0, 0, 1, 1], [], []>} : vector<16x128xf32>, vector<128x128xf32>, vector<16x128xf32> -> vector<16x128xf32>
        %42 = arith.addf %35, %41 : vector<16x128xf32>
        %c2 = arith.constant 2 : index
        %43 = arith.index_cast %1 : i32 to index
        %c0_25 = arith.constant 0 : index
        %44 = vector.load %arg7[%c2, %43, %c0_25] : memref<3x16x128xf32, #tpu.memory_space<vmem>>, vector<1x16x128xf32>
        %45 = vector.shape_cast %44 : vector<1x16x128xf32> to vector<16x128xf32>
        %c2_26 = arith.constant 2 : index
        %c0_27 = arith.constant 0 : index
        %c0_28 = arith.constant 0 : index
        %46 = vector.load %arg5[%c2_26, %c0_27, %c0_28] : memref<3x128x128xf32, #tpu.memory_space<vmem>>, vector<1x128x128xf32>
        %47 = vector.shape_cast %46 : vector<1x128x128xf32> to vector<128x128xf32>
        %cst_29 = arith.constant dense<0.000000e+00> : vector<16x128xf32>
        %48 = tpu.matmul %45, %47, %cst_29 {dimension_numbers = #tpu.dot_dimension_numbers<[1], [0], [0], [1], [0, 0, 1, 1], [], []>} : vector<16x128xf32>, vector<128x128xf32>, vector<16x128xf32> -> vector<16x128xf32>
        %49 = arith.addf %42, %48 : vector<16x128xf32>
        %c0_30 = arith.constant 0 : index
        %c0_31 = arith.constant 0 : index
        %50 = vector.load %arg6[%c0_30, %c0_31] : memref<16x128xf32, #tpu.memory_space<vmem>>, vector<16x128xf32>
        tpu.vector_store %arg6[%c0_30, %c0_31], %49 {strides = array<i32>} : memref<16x128xf32, #tpu.memory_space<vmem>>, vector<16x128xf32>,
      } else {
      }
    } else {
    }
    return
  }
  func.func @transform_0(%arg0: i32, %arg1: i32, %arg2: i32) -> (i32, i32) {
    %c0_i32 = arith.constant 0 : i32
    %0 = arith.cmpi eq, %arg0, %c0_i32 : i32
    %c0_i32_0 = arith.constant 0 : i32
    %1 = arith.select %0, %arg2, %c0_i32_0 : i32
    %c0_i32_1 = arith.constant 0 : i32
    %c0_i32_2 = arith.constant 0 : i32
    return %1, %c0_i32_1 : i32, i32
  }
  func.func @transform_1(%arg0: i32, %arg1: i32, %arg2: i32) -> (i32, i32) {
    %c0_i32 = arith.constant 0 : i32
    return %arg1, %arg2 : i32, i32
  }
  func.func @transform_2(%arg0: i32, %arg1: i32, %arg2: i32) -> (i32, i32, i32) {
    %c0_i32 = arith.constant 0 : i32
    %c0_i32_0 = arith.constant 0 : i32
    %c0_i32_1 = arith.constant 0 : i32
    %c0_i32_2 = arith.constant 0 : i32
    return %c0_i32, %c0_i32_0, %c0_i32_1 : i32, i32, i32
  }
  func.func @transform_3(%arg0: i32, %arg1: i32, %arg2: i32) -> (i32, i32) {
    %c1_i32 = arith.constant 1 : i32
    %0 = arith.cmpi eq, %arg0, %c1_i32 : i32
    %c0_i32 = arith.constant 0 : i32
    %1 = arith.select %0, %arg1, %c0_i32 : i32
    %c0_i32_0 = arith.constant 0 : i32
    %c0_i32_1 = arith.constant 0 : i32
    return %1, %c0_i32_0 : i32, i32
  }
}

</mosaic_0001>

<bundles_post_ra>
// kernel: tpu_custom_call.1
= control target key start
LH: loop header
LB: loop body
LE: loop exit
PB: predicated region body
PF: predicated region fallthrough
CT: control target
= control target key end

     0   :  { %8 = vsyncpa [#allocation5], 0  ;;  %s1710_s0 = inlined_call_operand.hbm [shape: f32[16,128], index: 0, kind: input, shape index: {}]   ;;  %s1711_s1 = inlined_call_operand.hbm [shape: f32[16,16], index: 1, kind: input, shape index: {}]   ;;  %s1712_s2 = inlined_call_operand.hbm [shape: f32[3,128,128], index: 2, kind: input, shape index: {}]   ;;  %s1713_s3 = inlined_call_operand.hbm [shape: f32[16,128], index: 3, kind: output, shape index: {}]  }
   0x1   :  { %10 = vsyncpa [#allocation5 + $0x1], 0 }
   0x2   :  { %11 = vsyncpa [#allocation8], 0 }
   0x3   :  { %12 = vsyncpa [#allocation6], 0 }
   0x4   :  { %14 = vsyncpa [#allocation6 + $0x1], 0  ;;  %s1530_s12 = smov 0   ;;  %s1532_s13 = smov 0  }
   0x5   :  { %s1534_s14 = smov 0  }
   0x6 LB: > { %s954_s15 = sadd.s32 4294967295, %s1499_s14   ;;  %s955_s16 = sadd.s32 4294967294, %s1499_s14   ;;  %s1499_s14 = sphi %s1534_s14, %s20_s14   ;;  %s1495_s13 = sphi %s1532_s13, %s1728_s13   ;;  %s1491_s12 = sphi %s1530_s12, %s1727_s12  }
   0x7   : > { %s39_s17 = sadd.s32 1, %s1495_s13  ;;  %p956_p0 = scmp.ge.s32.totalorder %s1499_s14, 1 }
   0x8   : > { %p41_p1 = scmp.ge.s32.totalorder %s39_s17, 2  ;;  %p153_p2 = scmp.lt.s32.totalorder %s1499_s14, 3 }
   0x9   : > { %p1552_p3 = scmp.eq.s32.totalorder %s954_s15, 0  ;;  %s1501_s20 = smov [#allocation7]  }
   0xa   : > { %s1730_s17 = smov (%p41_p1, %s39_s17), 0  ;;  %p1558_p4 = pnand %p956_p0, %p153_p2 }
   0xb   : > { %s1717_s18 = scalar_select %p1552_p3, 1, 0 }
   0xc   : > { %s1718_s19 = scalar_select %p1558_p4, 1, 0 }
   0xd   : > { %s169_s21 = sshll.u32 %s1501_s20, 4  ;;  %p1297_p5 = pneg %p1558_p4  ;;  %s170_s21 = int_to_ptr.vmem [resolvable:$true] %s169_s21 }
   0xe   : > { %s1502_s23 = smov [#allocation9]   ;;  %s1355_s27 = scalar_lea.hbm %s1711_s1, 256 }
   0xf   : > { %p1567_p7 = pnand %p1552_p3, %p1297_p5  ;;  %s182_s24 = sshll.u32 %s1502_s23, 4  ;;  %s183_s24 = int_to_ptr.vmem [resolvable:$true] %s182_s24 }
  0x10   : > { %p1356_p9 = scmp.ne.s32.totalorder %s1711_s1, %s1355_s27  ;;  %p1362_p13 = scmp.lt.u32.totalorder %s1355_s27, %s1711_s1 }
  0x11   : > { %p1357_p10 = pneg %p1567_p7 }
  0x13   : > { %p1358_p11 = pnand %p1357_p10, %p1356_p9 }
  0x15   : > { %p1359_p12 = pneg %p1358_p11 }
  0x17   : > { %p1364_p0 = pnand %p1362_p13, %p1359_p12 }
  0x19   : > { %1367 = shalt.err (!%p1364_p0)
}
  0x1a   : > { %s1368_s5 = scalar_lea.vmem %s170_s21, 256  ;;  %p1376_p6 = scmp.lt.s32.totalorder %s170_s21, %s170_s21 }
  0x1b   : > { %p1369_p1 = scmp.ne.s32.totalorder %s170_s21, %s1368_s5  ;;  %p1377_p8 = scmp.lt.s32.totalorder %s1368_s5, %s1368_s5 }
  0x1d   : > { %p1371_p2 = pnand %p1369_p1, %p1357_p10  ;;  %p1378_p3 = por %p1377_p8, %p1376_p6 }
  0x1f   : > { %p1372_p5 = pneg %p1371_p2 }
  0x21   : > { %p1379_p4 = pnand %p1378_p3, %p1372_p5 }
  0x23   : > { %1382 = shalt.err (!%p1379_p4)
}
  0x24   : > { %s1503_s6 = smov 128   ;;  %s1504_s7 = smov 8  }
  0x25   : > { %1300 = dma.hbm_to_vmem [thread:$0]  (!%p1567_p7), %s1711_s1, 256, %s170_s21, [#allocation8], %s1503_s6, %s1503_s6, %s1504_s7  }
  0x26   : > { %s1383_s20 = scalar_lea.hbm %s1712_s2, 6144 }
  0x27   : > { %p1384_p3 = scmp.ne.s32.totalorder %s1712_s2, %s1383_s20  ;;  %p1390_p8 = scmp.lt.u32.totalorder %s1383_s20, %s1712_s2 }
  0x29   : > { %p1386_p4 = pnand %p1384_p3, %p1357_p10 }
  0x2b   : > { %p1387_p6 = pneg %p1386_p4 }
  0x2d   : > { %p1392_p11 = pnand %p1390_p8, %p1387_p6 }
  0x2f   : > { %1395 = shalt.err (!%p1392_p11)
}
  0x30   : > { %s1396_s21 = scalar_lea.vmem %s183_s24, 6144  ;;  %p1404_p1 = scmp.lt.s32.totalorder %s183_s24, %s183_s24 }
  0x31   : > { %p1397_p12 = scmp.ne.s32.totalorder %s183_s24, %s1396_s21  ;;  %p1405_p2 = scmp.lt.s32.totalorder %s1396_s21, %s1396_s21 }
  0x33   : > { %p1399_p13 = pnand %p1397_p12, %p1357_p10  ;;  %p1406_p5 = por %p1405_p2, %p1404_p1 }
  0x35   : > { %p1400_p0 = pneg %p1399_p13 }
  0x37   : > { %p1407_p9 = pnand %p1406_p5, %p1400_p0 }
  0x39   : > { %1410 = shalt.err (!%p1407_p9)
}
  0x3a   : > { %1303 = dma.hbm_to_vmem [thread:$0]  (!%p1567_p7), %s1712_s2, 6144, %s183_s24, [#allocation8], %s1503_s6, %s1503_s6, %s1504_s7  }
  0x3b   : > { %p1720_p3 = scmp.lt.s32.totalorder %s1499_s14, 2  ;;  %p1721_p4 = scmp.eq.s32.totalorder %s1499_s14, 0 }
  0x3c   : > { %s1505_s4 = smov [#allocation4]   ;;  %s1411_s9 = scalar_lea.hbm %s1710_s0, 256 }
  0x3d   : > { %p1625_p10 = pnand %p1721_p4, %p1720_p3  ;;  %s209_s5 = sshll.u32 %s1505_s4, 4  ;;  %s210_s5 = int_to_ptr.vmem [resolvable:$true] %s209_s5 }
  0x3e   : > { %p1412_p9 = scmp.ne.s32.totalorder %s1710_s0, %s1411_s9  ;;  %p1418_p11 = scmp.lt.u32.totalorder %s1411_s9, %s1710_s0 }
  0x3f   : > { %p1413_p7 = pneg %p1625_p10 }
  0x41   : > { %p1414_p6 = pnand %p1413_p7, %p1412_p9 }
  0x43   : > { %p1415_p8 = pneg %p1414_p6 }
  0x45   : > { %p1420_p12 = pnand %p1418_p11, %p1415_p8 }
  0x47   : > { %1423 = shalt.err (!%p1420_p12)
}
  0x48   : > { %s1424_s23 = scalar_lea.vmem %s210_s5, 256  ;;  %s1431_s25 = scalar_lea.vmem %s210_s5, 512 }
  0x49   : > { %p1425_p13 = scmp.ne.s32.totalorder %s210_s5, %s1424_s23  ;;  %p1432_p2 = scmp.lt.s32.totalorder %s210_s5, %s210_s5 }
  0x4a   : > { %p1433_p5 = scmp.lt.s32.totalorder %s1431_s25, %s1424_s23 }
  0x4b   : > { %p1427_p0 = pnand %p1425_p13, %p1413_p7 }
  0x4c   : > { %p1434_p3 = por %p1433_p5, %p1432_p2 }
  0x4d   : > { %p1428_p1 = pneg %p1427_p0 }
  0x4f   : > { %p1435_p4 = pnand %p1434_p3, %p1428_p1 }
  0x51   : > { %1438 = shalt.err (!%p1435_p4)
}
  0x52   : > { %1307 = dma.hbm_to_vmem [thread:$0]  (!%p1625_p10), %s1710_s0, 256, %s210_s5, [#allocation5], %s1503_s6, %s1503_s6, %s1504_s7  }
  0x53   : > { %p1723_p9 = scmp.ne.s32.totalorder %s1718_s19, 0 }
  0x54   : > { %p1724_p7 = scmp.ne.s32.totalorder (!%p1723_p9), %s1717_s18, 0 }
  0x55   : > { %221 = sbr.rel (%p1723_p9) target bundleno = 880 (0x370), region = 32 }
  0x5c   : > { %1478 = dma.done.wait (%p1724_p7), [#allocation5], 256  }
  0x5d   : > { %1480 = vsyncadd (%p1724_p7), [#allocation5], 4294967040 }
  0x5e   : > { %1482 = dma.done.wait (%p1724_p7), [#allocation8], 6400  }
  0x5f   : > { %1484 = vsyncadd (%p1724_p7), [#allocation8], 4294960896  ;;  %p267_p6 = scmp.eq.s32.totalorder %s1491_s12, 0 }
  0x60   : > { %v273_v0 = vld [vmem:[#allocation4] sm:$0xff] (%p267_p6)  ;;  %v274_v1 = vld [vmem:[#allocation4 + $0x8] sm:$0xff] (%p267_p6) }
  0x61   : > { %272 = sbr.rel (!%p267_p6) target bundleno = 104 (0x68), region = 48  ;;  %276 = vst [vmem:[#allocation2] sm:$0xff] (%p267_p6), %v273_v0  ;;  %277 = vst [vmem:[#allocation2 + $0x8] sm:$0xff] (%p267_p6), %v274_v1 }
  0x68 PF: > { %v1506_v2 = vmov 0.0   ;;  %p966_p10 = scmp.ne.s32.totalorder %s1491_s12, 0 }
  0x69   : > { %282 = vst [vmem:[#allocation3] sm:$0xff] %v1506_v2  ;;  %283 = vst [vmem:[#allocation3 + $0x8] sm:$0xff] %v1506_v2  ;;  %v291_v3 = vld [vmem:[#allocation4] sm:$0xff] (!%p966_p10)  ;;  %v292_v4 = vld [vmem:[#allocation4 + $0x8] sm:$0xff] (!%p966_p10)  ;;  %vm293_vm0 = vcmask (!%p966_p10), 130048  }
  0x6a   : > { %286 = sbr.rel (%p966_p10) target bundleno = 328 (0x148), region = 56  ;;  %v289_v5 = vld [vmem:[#allocation7] sm:$0xff] (!%p966_p10)  ;;  %v1173_v6 = vpack.c.bf16 (!%p966_p10), %v292_v4, %v291_v3  ;;  %v290_v7 = vld [vmem:[#allocation7 + $0x8] sm:$0xff] (!%p966_p10) }
  0x6b   : > { %1058 = vmatprep.mubr.msk.f32.mxu0 (!%p966_p10), %vm293_vm0, %v289_v5 }
  0x6c   : > { %1174 = vmatprep.subr.bf16.mxu0 (!%p966_p10), %v1173_v6 }
  0x6d   : > { %1176 = vmatpush3.bf16.msra.mxu0 (!%p966_p10), %v1173_v6 }
  0x70   : > { %1059 = vmatmul.mubr.msk.f32.vlgmr.msra.gmra.mrb[0].mxu0 (!%p966_p10), %vm293_vm0, %v290_v7  ;;  %v288_v8 = vld [vmem:[#allocation3 + $0x8] sm:$0xff] (!%p966_p10)  ;;  %v287_v9 = vld [vmem:[#allocation3] sm:$0xff] (!%p966_p10) }
 0x143   : > { %v1060_v10 = vpop.f32.mrb[0].mxu0 }
 0x144   : > { %v376_v11 = vadd.f32 %v1060_v10, %v288_v8  ;;  %v366_v12 = vpop.f32.mrb[1].mxu0 }
 0x145   : > { %v375_v13 = vadd.f32 %v366_v12, %v287_v9 }
 0x146   : > { %378 = vst [vmem:[#allocation3 + $0x8] sm:$0xff] %v376_v11 }
 0x147   : > { %377 = vst [vmem:[#allocation3] sm:$0xff] %v375_v13 }
 0x148 PF: > { %p969_p8 = scmp.le.s32.totalorder %s1491_s12, 0 }
 0x149   : > { %s970_s18 = sshll.u32 (!%p969_p8), %s1491_s12, 4  ;;  %v385_v14 = vld [vmem:[#allocation7] sm:$0xff] (!%p969_p8)  ;;  %vm392_vm1 = vcmask (!%p969_p8), 130048   ;;  %v386_v18 = vld [vmem:[#allocation7 + $0x8] sm:$0xff] (!%p969_p8) }
 0x14a   : > { %382 = sbr.rel (%p969_p8) target bundleno = 554 (0x22a), region = 60  ;;  %1065 = vmatprep.mubr.msk.f32.mxu0 (!%p969_p8), %vm392_vm1, %v385_v14  ;;  %s389_s19 = scalar_lea.vmem (!%p969_p8), [#allocation2], %s970_s18 }
 0x14b   : > { %v390_v15 = vld [vmem:[%s389_s19] sm:$0xff] (!%p969_p8)  ;;  %v391_v16 = vld [vmem:[%s389_s19 + $0x8] sm:$0xff] (!%p969_p8) }
 0x14c   : > { %v1177_v17 = vpack.c.bf16 (!%p969_p8), %v391_v16, %v390_v15 }
 0x14d   : > { %v384_v19 = vld [vmem:[#allocation3 + $0x8] sm:$0xff] (!%p969_p8) }
 0x14e   : > { %1178 = vmatprep.subr.bf16.mxu0 (!%p969_p8), %v1177_v17  ;;  %v383_v20 = vld [vmem:[#allocation3] sm:$0xff] (!%p969_p8) }
 0x14f   : > { %1180 = vmatpush3.bf16.msra.mxu0 (!%p969_p8), %v1177_v17 }
 0x152   : > { %1066 = vmatmul.mubr.msk.f32.vlgmr.msra.gmra.mrb[0].mxu0 %vm392_vm1, %v386_v18 }
 0x225   : > { %v1067_v21 = vpop.f32.mrb[0].mxu0 }
 0x226   : > { %v475_v22 = vadd.f32 %v1067_v21, %v384_v19  ;;  %v465_v23 = vpop.f32.mrb[1].mxu0 }
 0x227   : > { %v474_v24 = vadd.f32 %v465_v23, %v383_v20 }
 0x228   : > { %477 = vst [vmem:[#allocation3 + $0x8] sm:$0xff] %v475_v22 }
 0x229   : > { %476 = vst [vmem:[#allocation3] sm:$0xff] %v474_v24 }
 0x22a PF: > { %483 = sbr.rel (%p966_p10) target bundleno = 562 (0x232), region = 68 }
 0x22f   : > { %v485_v26 = vld [vmem:[#allocation3 + $0x8] sm:$0xff] (!%p966_p10) }
 0x230   : > { %v484_v25 = vld [vmem:[#allocation3] sm:$0xff] (!%p966_p10)  ;;  %975 = vst [vmem:[#allocation2 + $0x18] sm:$0xff] (!%p966_p10), %v485_v26 }
 0x231   : > { %974 = vst [vmem:[#allocation2 + $0x10] sm:$0xff] %v484_v25 }
 0x232 PF: > { %492 = sbr.rel (%p969_p8) target bundleno = 572 (0x23c), region = 72  ;;  %v493_v27 = vld [vmem:[#allocation3] sm:$0xff] (!%p969_p8)  ;;  %v494_v28 = vld [vmem:[#allocation3 + $0x8] sm:$0xff] (!%p969_p8)  ;;  %s977_s6 = sadd.s32 (!%p969_p8), 4294967295, %s1491_s12 }
 0x233   : > { %s979_s7 = sshll.u32 (!%p969_p8), %s1491_s12, 4  ;;  %v495_v29 = vmul.f32 (!%p969_p8), 2.0, %v493_v27  ;;  %v496_v30 = vmul.f32 (!%p969_p8), 2.0, %v494_v28  ;;  %s978_s21 = sshll.u32 (!%p969_p8), %s977_s6, 4 }
 0x234   : > { %s500_s28 = scalar_lea.vmem (!%p969_p8), [#allocation2], %s978_s21  ;;  %s883_s29 = scalar_lea.vmem (!%p969_p8), [#allocation2], %s979_s7 }
 0x238   : > { %v501_v31 = vld [vmem:[%s500_s28] sm:$0xff] (!%p969_p8)  ;;  %v502_v32 = vld [vmem:[%s500_s28 + $0x8] sm:$0xff] (!%p969_p8) }
 0x239   : > { %v503_v33 = vsub.f32 %v495_v29, %v501_v31  ;;  %v504_v34 = vsub.f32 %v496_v30, %v502_v32 }
 0x23b   : > { %980 = vst [vmem:[%s883_s29 + $0x10] sm:$0xff] %v503_v33  ;;  %981 = vst [vmem:[%s883_s29 + $0x18] sm:$0xff] %v504_v34 }
 0x23c PF: > { %p982_p11 = scmp.ne.s32.totalorder %s1491_s12, 1 }
 0x23d   : > { %v518_v35 = vld [vmem:[#allocation9] sm:$0xff] (!%p982_p11)  ;;  %v519_v36 = vld [vmem:[#allocation9 + $0x8] sm:$0xff] (!%p982_p11)  ;;  %v520_v37 = vld [vmem:[#allocation9 + $0x10] sm:$0xff] (!%p982_p11) }
 0x23e   : > { %514 = sbr.rel (%p982_p11) target bundleno = 856 (0x358), region = 76  ;;  %v1213_v38 = vpack.c.bf16 (!%p982_p11), %v519_v36, %v518_v35  ;;  %v521_v39 = vld [vmem:[#allocation9 + $0x18] sm:$0xff] (!%p982_p11)  ;;  %v522_v41 = vld [vmem:[#allocation9 + $0x20] sm:$0xff] (!%p982_p11)  ;;  %v523_v42 = vld [vmem:[#allocation9 + $0x28] sm:$0xff] (!%p982_p11) }
 0x23f   : > { %v1217_v40 = vpack.c.bf16 (!%p982_p11), %v521_v39, %v520_v37  ;;  %v1221_v43 = vpack.c.bf16 (!%p982_p11), %v523_v42, %v522_v41  ;;  %v539_v44 = vld [vmem:[#allocation9 + $0x80] sm:$0xff] (!%p982_p11)  ;;  %v540_v45 = vld [vmem:[#allocation9 + $0x88] sm:$0xff] (!%p982_p11)  ;;  %v524_v46 = vld [vmem:[#allocation9 + $0x30] sm:$0xff] (!%p982_p11) }
 0x240   : > { %1214 = vmatprep.subr.bf16.mxu0 (!%p982_p11), %v1213_v38  ;;  %v525_v47 = vld [vmem:[#allocation9 + $0x38] sm:$0xff] (!%p982_p11)  ;;  %v1181_v48 = vpack.c.bf16 (!%p982_p11), %v540_v45, %v539_v44  ;;  %v541_v50 = vld [vmem:[#allocation9 + $0x90] sm:$0xff] (!%p982_p11)  ;;  %v543_v53 = vld [vmem:[#allocation9 + $0xa0] sm:$0xff] (!%p982_p11) }
 0x241   : > { %1216 = vmatpush3.bf16.msra.mxu0 (!%p982_p11), %v1213_v38  ;;  %v542_v51 = vld [vmem:[#allocation9 + $0x98] sm:$0xff] (!%p982_p11)  ;;  %v1225_v54 = vpack.c.bf16 (!%p982_p11), %v525_v47, %v524_v46  ;;  %v544_v55 = vld [vmem:[#allocation9 + $0xa8] sm:$0xff] (!%p982_p11)  ;;  %v526_v56 = vld [vmem:[#allocation9 + $0x40] sm:$0xff] (!%p982_p11) }
 0x242   : > { %1218 = vmatprep.subr.bf16.mxu0 (!%p982_p11), %v1217_v40  ;;  %v516_v49 = vld [vmem:[#allocation2] sm:$0xff] (!%p982_p11)  ;;  %1182 = vmatprep.subr.bf16.mxu1 (!%p982_p11), %v1181_v48  ;;  %v1185_v52 = vpack.c.bf16 (!%p982_p11), %v542_v51, %v541_v50  ;;  %v527_v57 = vld [vmem:[#allocation9 + $0x48] sm:$0xff] (!%p982_p11)  ;;  %v1189_v58 = vpack.c.bf16 (!%p982_p11), %v544_v55, %v543_v53  ;;  %v546_v60 = vld [vmem:[#allocation9 + $0xb8] sm:$0xff] (!%p982_p11) }
 0x243   : > { %1135 = vmatprep.mubr.f32.mxu0 (!%p982_p11), %v516_v49  ;;  %1184 = vmatpush3.bf16.msra.mxu1 (!%p982_p11), %v1181_v48  ;;  %v545_v59 = vld [vmem:[#allocation9 + $0xb0] sm:$0xff] (!%p982_p11)  ;;  %v1229_v61 = vpack.c.bf16 (!%p982_p11), %v527_v57, %v526_v56  ;;  %v529_v63 = vld [vmem:[#allocation9 + $0x58] sm:$0xff] (!%p982_p11)  ;;  %v547_v1 = vld [vmem:[#allocation9 + $0xc0] sm:$0xff] (!%p982_p11) }
 0x244   : > { %1186 = vmatprep.subr.bf16.mxu1 (!%p982_p11), %v1185_v52  ;;  %v528_v62 = vld [vmem:[#allocation9 + $0x50] sm:$0xff] (!%p982_p11)  ;;  %v1193_v0 = vpack.c.bf16 (!%p982_p11), %v546_v60, %v545_v59  ;;  %v548_v2 = vld [vmem:[#allocation9 + $0xc8] sm:$0xff] (!%p982_p11)  ;;  %v983_v3 = vld [vmem:[#allocation2 + $0x10] sm:$0xff] (!%p982_p11) }
 0x245   : > { %1220 = vmatpush3.bf16.msra.mxu0 %v1217_v40  ;;  %v1233_v4 = vpack.c.bf16 %v529_v63, %v528_v62  ;;  %v530_v5 = vld [vmem:[#allocation9 + $0x60] sm:$0xff]  ;;  %v531_v6 = vld [vmem:[#allocation9 + $0x68] sm:$0xff]  ;;  %v1197_v7 = vpack.c.bf16 %v548_v2, %v547_v1  ;;  %1100 = vmatprep.mubr.f32.mxu1 %v983_v3  ;;  %v549_v8 = vld [vmem:[#allocation9 + $0xd0] sm:$0xff] }
 0x246   : > { %1222 = vmatprep.subr.bf16.mxu0 %v1221_v43  ;;  %v550_v9 = vld [vmem:[#allocation9 + $0xd8] sm:$0xff]  ;;  %v1237_v10 = vpack.c.bf16 %v531_v6, %v530_v5  ;;  %v532_v11 = vld [vmem:[#allocation9 + $0x70] sm:$0xff]  ;;  %v551_v14 = vld [vmem:[#allocation9 + $0xe0] sm:$0xff] }
 0x247   : > { %1188 = vmatpush3.bf16.msra.mxu1 %v1185_v52  ;;  %v533_v12 = vld [vmem:[#allocation9 + $0x78] sm:$0xff]  ;;  %v1201_v13 = vpack.c.bf16 %v550_v9, %v549_v8  ;;  %v552_v15 = vld [vmem:[#allocation9 + $0xe8] sm:$0xff]  ;;  %v710_v17 = vld [vmem:[#allocation9 + $0x100] sm:$0xff] }
 0x248   : > { %1190 = vmatprep.subr.bf16.mxu1 %v1189_v58  ;;  %v1241_v16 = vpack.c.bf16 %v533_v12, %v532_v11  ;;  %v711_v18 = vld [vmem:[#allocation9 + $0x108] sm:$0xff]  ;;  %v1205_v19 = vpack.c.bf16 %v552_v15, %v551_v14  ;;  %v553_v20 = vld [vmem:[#allocation9 + $0xf0] sm:$0xff]  ;;  %v554_v21 = vld [vmem:[#allocation9 + $0xf8] sm:$0xff] }
 0x249   : > { %1224 = vmatpush3.bf16.msra.mxu0 %v1221_v43  ;;  %v1245_v22 = vpack.c.bf16 %v711_v18, %v710_v17  ;;  %v712_v23 = vld [vmem:[#allocation9 + $0x110] sm:$0xff]  ;;  %v713_v24 = vld [vmem:[#allocation9 + $0x118] sm:$0xff]  ;;  %v1209_v25 = vpack.c.bf16 %v554_v21, %v553_v20  ;;  %v714_v29 = vld [vmem:[#allocation9 + $0x120] sm:$0xff] }
 0x24a   : > { %1226 = vmatprep.subr.bf16.mxu0 %v1225_v54  ;;  %v517_v26 = vld [vmem:[#allocation2 + $0x8] sm:$0xff]  ;;  %v1249_v27 = vpack.c.bf16 %v713_v24, %v712_v23  ;;  %v985_v28 = vld [vmem:[#allocation2 + $0x20] sm:$0xff]  ;;  %v715_v30 = vld [vmem:[#allocation9 + $0x128] sm:$0xff] }
 0x24b   : > { %1192 = vmatpush3.bf16.msra.mxu1 %v1189_v58  ;;  %v1253_v31 = vpack.c.bf16 %v715_v30, %v714_v29  ;;  %v984_v32 = vld [vmem:[#allocation2 + $0x18] sm:$0xff]  ;;  %v716_v33 = vld [vmem:[#allocation9 + $0x130] sm:$0xff]  ;;  %v717_v34 = vld [vmem:[#allocation9 + $0x138] sm:$0xff] }
 0x24c   : > { %1194 = vmatprep.subr.bf16.mxu1 %v1193_v0  ;;  %v1257_v35 = vpack.c.bf16 %v717_v34, %v716_v33  ;;  %v718_v36 = vld [vmem:[#allocation9 + $0x140] sm:$0xff]  ;;  %v719_v37 = vld [vmem:[#allocation9 + $0x148] sm:$0xff]  ;;  %v720_v39 = vld [vmem:[#allocation9 + $0x150] sm:$0xff] }
 0x24d   : > { %1228 = vmatpush3.bf16.msra.mxu0 %v1225_v54  ;;  %v1261_v38 = vpack.c.bf16 %v719_v37, %v718_v36  ;;  %v721_v40 = vld [vmem:[#allocation9 + $0x158] sm:$0xff]  ;;  %v722_v42 = vld [vmem:[#allocation9 + $0x160] sm:$0xff]  ;;  %v723_v43 = vld [vmem:[#allocation9 + $0x168] sm:$0xff] }
 0x24e   : > { %1230 = vmatprep.subr.bf16.mxu0 %v1229_v61  ;;  %v1265_v41 = vpack.c.bf16 %v721_v40, %v720_v39  ;;  %v1269_v44 = vpack.c.bf16 %v723_v43, %v722_v42  ;;  %v724_v45 = vld [vmem:[#allocation9 + $0x170] sm:$0xff]  ;;  %v725_v46 = vld [vmem:[#allocation9 + $0x178] sm:$0xff] }
 0x24f   : > { %1196 = vmatpush3.bf16.msra.mxu1 %v1193_v0  ;;  %v1273_v47 = vpack.c.bf16 %v725_v46, %v724_v45  ;;  %v986_v48 = vld [vmem:[#allocation2 + $0x28] sm:$0xff] }
 0x250   : > { %1198 = vmatprep.subr.bf16.mxu1 %v1197_v7 }
 0x251   : > { %1232 = vmatpush3.bf16.msra.mxu0 %v1229_v61 }
 0x252   : > { %1234 = vmatprep.subr.bf16.mxu0 %v1233_v4 }
 0x253   : > { %1200 = vmatpush3.bf16.msra.mxu1 %v1197_v7 }
 0x254   : > { %1202 = vmatprep.subr.bf16.mxu1 %v1201_v13 }
 0x255   : > { %1236 = vmatpush3.bf16.msra.mxu0 %v1233_v4 }
 0x256   : > { %1238 = vmatprep.subr.bf16.mxu0 %v1237_v10 }
 0x257   : > { %1204 = vmatpush3.bf16.msra.mxu1 %v1201_v13 }
 0x258   : > { %1206 = vmatprep.subr.bf16.mxu1 %v1205_v19 }
 0x259   : > { %1240 = vmatpush3.bf16.msra.mxu0 %v1237_v10 }
 0x25a   : > { %1242 = vmatprep.subr.bf16.mxu0 %v1241_v16 }
 0x25b   : > { %1208 = vmatpush3.bf16.msra.mxu1 %v1205_v19 }
 0x25c   : > { %1210 = vmatprep.subr.bf16.mxu1 %v1209_v25 }
 0x25d   : > { %1244 = vmatpush3.bf16.msra.mxu0 %v1241_v16 }
 0x25e   : > { %1246 = vmatprep.subr.bf16.mxu0 %v1245_v22 }
 0x25f   : > { %1212 = vmatpush3.bf16.msra.mxu1 %v1209_v25 }
 0x260   : > { %1136 = vmatmul.mubr.f32.vlgmr.msra.gmra.mrb[0].mxu0 %v517_v26 }
 0x261   : > { %1248 = vmatpush3.bf16.msra.mxu0 %v1245_v22  ;;  %1170 = vmatprep.mubr.f32.mxu0 %v985_v28 }
 0x262   : > { %1250 = vmatprep.subr.bf16.mxu0 %v1249_v27  ;;  %1101 = vmatmul.mubr.f32.vlgmr.msra.gmra.mrb[0].mxu1 %v984_v32 }
 0x265   : > { %1252 = vmatpush3.bf16.msra.mxu0 %v1249_v27 }
 0x266   : > { %1254 = vmatprep.subr.bf16.mxu0 %v1253_v31 }
 0x269   : > { %1256 = vmatpush3.bf16.msra.mxu0 %v1253_v31 }
 0x26a   : > { %1258 = vmatprep.subr.bf16.mxu0 %v1257_v35 }
 0x26d   : > { %1260 = vmatpush3.bf16.msra.mxu0 %v1257_v35 }
 0x26e   : > { %1262 = vmatprep.subr.bf16.mxu0 %v1261_v38 }
 0x271   : > { %1264 = vmatpush3.bf16.msra.mxu0 %v1261_v38 }
 0x272   : > { %1266 = vmatprep.subr.bf16.mxu0 %v1265_v41 }
 0x275   : > { %1268 = vmatpush3.bf16.msra.mxu0 %v1265_v41 }
 0x276   : > { %1270 = vmatprep.subr.bf16.mxu0 %v1269_v44 }
 0x279   : > { %1272 = vmatpush3.bf16.msra.mxu0 %v1269_v44 }
 0x27a   : > { %1274 = vmatprep.subr.bf16.mxu0 %v1273_v47 }
 0x27d   : > { %1276 = vmatpush3.bf16.msra.mxu0 %v1273_v47 }
 0x280   : > { %1171 = vmatmul.mubr.f32.vlgmr.msra.gmra.mrb[0].mxu0 %v986_v48 }
 0x335   : > { %v1102_v49 = vpop.f32.mrb[0].mxu1 }
 0x336   : > { %v621_v50 = vpop.f32.mrb[1].mxu1 }
 0x353   : > { %v1172_v51 = vpop.f32.mrb[0].mxu0 }
 0x354   : > { %v1277_v52 = vadd.f32 %v1172_v51, %v1102_v49  ;;  %v792_v53 = vpop.f32.mrb[1].mxu0 }
 0x355   : > { %v1278_v54 = vadd.f32 %v792_v53, %v621_v50 }
 0x356   : > { %804 = vst [vmem:[#allocation10 + $0x8] sm:$0xff] %v1277_v52 }
 0x357   : > { %803 = vst [vmem:[#allocation10] sm:$0xff] %v1278_v54 }
 0x358 PF: > { %p1675_p12 = scmp.eq.s32.totalorder %s954_s15, 1  ;;  %s1507_s30 = smov [#allocation10]  }
 0x359   : > { %s821_s4 = sshll.u32 %s1507_s30, 4  ;;  %s822_s4 = int_to_ptr.vmem [resolvable:$true] %s821_s4 }
 0x35a   : > { %s1439_s5 = scalar_lea.vmem %s822_s4, 256  ;;  %s1445_s22 = scalar_lea.vmem %s822_s4, 512 }
 0x35b   : > { %p1440_p13 = scmp.ne.s32.totalorder %s822_s4, %s1439_s5  ;;  %p1446_p2 = scmp.lt.s32.totalorder %s822_s4, %s822_s4 }
 0x35c   : > { %p1447_p5 = scmp.lt.s32.totalorder %s1445_s22, %s1439_s5 }
 0x35d   : > { %p1441_p0 = pnand %p1440_p13, %p1675_p12 }
 0x35e   : > { %p1448_p3 = por %p1447_p5, %p1446_p2 }
 0x35f   : > { %p1442_p1 = pneg %p1441_p0 }
 0x361   : > { %p1449_p4 = pnand %p1448_p3, %p1442_p1 }
 0x363   : > { %1452 = shalt.err (!%p1449_p4)
}
 0x364   : > { %s1453_s9 = scalar_lea.hbm %s1713_s3, 256 }
 0x365   : > { %p1454_p9 = scmp.ne.s32.totalorder %s1713_s3, %s1453_s9  ;;  %p1459_p10 = scmp.lt.u32.totalorder %s1453_s9, %s1713_s3 }
 0x367   : > { %p1455_p7 = pnand %p1454_p9, %p1675_p12 }
 0x369   : > { %p1456_p6 = pneg %p1455_p7 }
 0x36b   : > { %p1461_p8 = pnand %p1459_p10, %p1456_p6 }
 0x36d   : > { %1464 = shalt.err (!%p1461_p8)
}
 0x36e   : > { %s1508_s23 = smov 128   ;;  %s1509_s25 = smov 8  }
 0x36f   : > { %1294 = dma.vmem_to_hbm [thread:$0]  (%p1675_p12), %s822_s4, 256, %s1713_s3, [#allocation6], %s1508_s23, %s1508_s23, %s1509_s25  }
 0x370 PF: > { %p1321_p11 = scmp.eq.s32.totalorder %s955_s16, 1  ;;  %p1726_p13 = scmp.ge.s32.totalorder %s1499_s14, 2 }
 0x372   : > { %p1309_p0 = pnand %p1321_p11, %p1726_p13 }
 0x374   : > { %1486 = dma.done.wait (!%p1309_p0), [#allocation6], 256  }
 0x375   : > { %1488 = vsyncadd (!%p1309_p0), [#allocation6], 4294967040  ;;  %s20_s14 = sadd.s32 1, %s1499_s14   ;;  %s1727_s12 = smov %s1495_s13 }
 0x376   : > { %p17_p1 = scmp.ge.s32.totalorder %s20_s14, 4   ;;  %s1728_s13 = smov %s1730_s17 }
 0x378   :  { %19 = sbr.rel (!%p17_p1) target bundleno = 6 (0x6), region = 128 }
 0x37f   :  { %842 = vsyncpa [#allocation5], 1 }
 0x380   :  { %844 = vsyncpa [#allocation5 + $0x1], 1 }
 0x381   :  { %845 = vsyncpa [#allocation8], 1 }
 0x382   :  { %846 = vsyncpa [#allocation6], 1 }
 0x383   :  { %848 = vsyncpa [#allocation6 + $0x1], 1 }

</bundles_post_ra>
